<compile_context>
chip_gen: v7x
topology: tpu7x:2x2x1
jax: 0.10.0
libtpu: 0.0.40
codegen_flags: <defaults>
</compile_context>

<pallas_src>
import jax
import jax.numpy as jnp
from jax.experimental import pallas as pl
from jax.experimental.pallas import tpu as pltpu

# ---------------- configuration (small, consistent with the module) ----------------
B = 2          # batch
S = 8          # sequence length
D_MODEL = 32   # d_model
NUM_HEADS = 4
D_K = D_MODEL // NUM_HEADS
EPS = 1e-6
BS = B * S


def mha_kernel(q_ref, k_ref, v_ref, w_ref, vec_ref, out_ref):
    # q_ref/k_ref/v_ref: (B, S, D)
    # w_ref:   (D, 4*D)  lane-concat [Wq^T | Wk^T | Wv^T | Wo^T]  (in_feat, out_feat)
    # vec_ref: (8, D)    rows = [bq, bk, bv, bo, gamma, beta, 0, 0]
    # out_ref: (B, S, D)
    q2 = q_ref[...].reshape(BS, D_MODEL)
    k2 = k_ref[...].reshape(BS, D_MODEL)
    v2 = v_ref[...].reshape(BS, D_MODEL)
    w = w_ref[...]
    vec = vec_ref[...]

    residual = q2                                           # (BS, D)

    # ---- fused q/k/v projections: one (3*BS, D) @ (D, 3*D) MXU matmul ----
    xcat = jnp.concatenate([q2, k2, v2], axis=0)            # (48, 32)
    proj = jnp.dot(xcat, w[:, 0:3 * D_MODEL],
                   preferred_element_type=jnp.float32)      # (48, 96)
    Q = proj[0:BS, 0:D_MODEL] + vec[0:1, :]                 # q @ Wq^T + bq
    K = proj[BS:2 * BS, D_MODEL:2 * D_MODEL] + vec[1:2, :]  # k @ Wk^T + bk
    V = proj[2 * BS:3 * BS, 2 * D_MODEL:3 * D_MODEL] + vec[2:3, :]

    Q3 = Q.reshape(B, S, D_MODEL)
    K3 = K.reshape(B, S, D_MODEL)
    V3 = V.reshape(B, S, D_MODEL)

    # ---- head split: fused (H*B) batch axis, n = h*B + b ----
    Qh = jnp.stack([Q3[:, :, h * D_K:(h + 1) * D_K] for h in range(NUM_HEADS)],
                   axis=0).reshape(NUM_HEADS * B, S, D_K)
    Kh = jnp.stack([K3[:, :, h * D_K:(h + 1) * D_K] for h in range(NUM_HEADS)],
                   axis=0).reshape(NUM_HEADS * B, S, D_K)
    Vh = jnp.stack([V3[:, :, h * D_K:(h + 1) * D_K] for h in range(NUM_HEADS)],
                   axis=0).reshape(NUM_HEADS * B, S, D_K)

    scale = 1.0 / (D_K ** 0.5)
    # One batched QK^T over all (head, batch) pairs; transpose folded into contraction.
    scores = jnp.einsum('nqd,nkd->nqk', Qh, Kh,
                        preferred_element_type=jnp.float32) * scale   # (H*B, Sq, Sk)
    s4 = scores.reshape(NUM_HEADS, B, S, S)

    # Softmax across the HEAD dimension (reproduces F.softmax(scores, dim=1)).
    m = jnp.maximum(jnp.maximum(s4[0], s4[1]), jnp.maximum(s4[2], s4[3]))  # (B, Sq, Sk)
    p = jnp.exp(s4 - m)                                                    # (H, B, Sq, Sk)
    denom = p[0] + p[1] + p[2] + p[3]                                      # (B, Sq, Sk)
    attn = p * pl.reciprocal(denom)                                        # broadcast over heads

    # One batched attn @ V over all (head, batch) pairs.
    outh = jnp.einsum('nqk,nkd->nqd', attn.reshape(NUM_HEADS * B, S, S), Vh,
                      preferred_element_type=jnp.float32)                  # (H*B, S, d_k)
    out4 = outh.reshape(NUM_HEADS, B, S, D_K)

    # Lane-concat head outputs -> (BS, D); single output projection against full Wo^T.
    ocat = jnp.concatenate([out4[h] for h in range(NUM_HEADS)], axis=-1)   # (B, S, D)
    o = jnp.dot(ocat.reshape(BS, D_MODEL), w[:, 3 * D_MODEL:4 * D_MODEL],
                preferred_element_type=jnp.float32) + vec[3:4, :]          # (BS, D)

    # (identity) dropout + residual + custom LayerNorm (unbiased std, eps on std).
    x = o + residual
    mean = jnp.mean(x, axis=-1, keepdims=True)
    diff = x - mean
    var_unbiased = jnp.sum(diff * diff, axis=-1, keepdims=True) / jnp.float32(D_MODEL - 1)
    std = jnp.sqrt(var_unbiased)
    y = vec[4:5, :] * diff * pl.reciprocal(std + jnp.float32(EPS)) + vec[5:6, :]

    out_ref[...] = y.reshape(B, S, D_MODEL).astype(out_ref.dtype)


@jax.jit
def multi_head_attention(q, k, v, packed_params):
    w_slab, vec_slab = packed_params
    b, s, d = q.shape

    return pl.pallas_call(
        mha_kernel,
        out_shape=jax.ShapeDtypeStruct((b, s, d), q.dtype),
        grid_spec=pltpu.PrefetchScalarGridSpec(
            num_scalar_prefetch=0,
            grid=(1,),                                   # whole problem fits one step
            in_specs=[
                pl.BlockSpec((b, s, d), lambda i: (0, 0, 0)),     # q
                pl.BlockSpec((b, s, d), lambda i: (0, 0, 0)),     # k
                pl.BlockSpec((b, s, d), lambda i: (0, 0, 0)),     # v
                pl.BlockSpec(w_slab.shape, lambda i: (0, 0)),     # (32, 128) weight slab
                pl.BlockSpec(vec_slab.shape, lambda i: (0, 0)),   # (8, 32) bias/ln slab
            ],
            out_specs=pl.BlockSpec((b, s, d), lambda i: (0, 0, 0)),
        ),
        compiler_params=pltpu.CompilerParams(
            dimension_semantics=("arbitrary",)),
    )(q, k, v, w_slab, vec_slab)


def reference_mha(q, k, v, params):
    """Pure-JAX reference reproducing the PyTorch forward (eval mode)."""
    wq_t, bq, wk_t, bk, wv_t, bv, wo_t, bo, gamma, beta = params
    b, s, d = q.shape
    residual = q
    Q = (q @ wq_t + bq).reshape(b, s, NUM_HEADS, D_K).transpose(0, 2, 1, 3)
    K = (k @ wk_t + bk).reshape(b, s, NUM_HEADS, D_K).transpose(0, 2, 1, 3)
    V = (v @ wv_t + bv).reshape(b, s, NUM_HEADS, D_K).transpose(0, 2, 1, 3)
    scores = jnp.einsum('bhid,bhjd->bhij', Q, K) / jnp.sqrt(jnp.float32(D_K))
    attn = jax.nn.softmax(scores, axis=1)      # dim=1 == heads, as in the PyTorch code
    out = jnp.einsum('bhij,bhjd->bhid', attn, V)
    out = out.transpose(0, 2, 1, 3).reshape(b, s, d)
    out = out @ wo_t + bo
    x = out + residual
    mean = x.mean(-1, keepdims=True)
    diff = x - mean
    std = jnp.sqrt(jnp.sum(diff * diff, axis=-1, keepdims=True) / (d - 1))
    return gamma * diff / (std + EPS) + beta


def init_params(key):
    ks = jax.random.split(key, 8)
    scale = 1.0 / jnp.sqrt(jnp.float32(D_MODEL))
    # nn.Linear weights are (out, in); store transposed (in, out) for the kernel.
    wq_t = jax.random.normal(ks[0], (D_MODEL, D_MODEL), jnp.float32) * scale
    wk_t = jax.random.normal(ks[1], (D_MODEL, D_MODEL), jnp.float32) * scale
    wv_t = jax.random.normal(ks[2], (D_MODEL, D_MODEL), jnp.float32) * scale
    wo_t = jax.random.normal(ks[3], (D_MODEL, D_MODEL), jnp.float32) * scale
    bq = jax.random.normal(ks[4], (1, D_MODEL), jnp.float32) * 0.01
    bk = jax.random.normal(ks[5], (1, D_MODEL), jnp.float32) * 0.01
    bv = jax.random.normal(ks[6], (1, D_MODEL), jnp.float32) * 0.01
    bo = jax.random.normal(ks[7], (1, D_MODEL), jnp.float32) * 0.01
    gamma = jnp.ones((1, D_MODEL), jnp.float32)
    beta = jnp.zeros((1, D_MODEL), jnp.float32)
    return (wq_t, bq, wk_t, bk, wv_t, bv, wo_t, bo, gamma, beta)


def pack_params(params):
    """Pack 10 parameter tensors into 2 lane-dense operands."""
    wq_t, bq, wk_t, bk, wv_t, bv, wo_t, bo, gamma, beta = params
    # (D, 4*D) = (32, 128): lane-concat — 128-lane dense, single DMA.
    w_slab = jnp.concatenate([wq_t, wk_t, wv_t, wo_t], axis=1)
    pad = jnp.zeros((2, D_MODEL), jnp.float32)                      # sublane-pad to 8 rows
    vec_slab = jnp.concatenate([bq, bk, bv, bo, gamma, beta, pad], axis=0)  # (8, D)
    return (w_slab, vec_slab)


if __name__ == "__main__":
    key = jax.random.PRNGKey(0)
    kq, kk, kv, kp = jax.random.split(key, 4)
    q = jax.random.normal(kq, (B, S, D_MODEL), jnp.float32)
    k = jax.random.normal(kk, (B, S, D_MODEL), jnp.float32)
    v = jax.random.normal(kv, (B, S, D_MODEL), jnp.float32)
    params = init_params(kp)
    packed = pack_params(params)

    out = multi_head_attention(q, k, v, packed)
    out = jax.block_until_ready(out)

    ref = reference_mha(q, k, v, params)
    assert out.shape == (B, S, D_MODEL)
    assert jnp.allclose(out, ref, atol=1e-4, rtol=1e-4), "mismatch vs pure-JAX reference"

    print("KERNEL_OK")
</pallas_src>

<mosaic_0001>
module attributes {stable_mosaic.version = 11 : i64} {
  func.func @mha_kernel(%arg0: i32, %arg1: memref<2x8x32xf32, #tpu.memory_space<vmem>>, %arg2: memref<2x8x32xf32, #tpu.memory_space<vmem>>, %arg3: memref<2x8x32xf32, #tpu.memory_space<vmem>>, %arg4: memref<32x128xf32, #tpu.memory_space<vmem>>, %arg5: memref<8x32xf32, #tpu.memory_space<vmem>>, %arg6: memref<2x8x32xf32, #tpu.memory_space<vmem>>) attributes {dimension_semantics = [#tpu.dimension_semantics<arbitrary>], iteration_bounds = array<i64: 1>, scalar_prefetch = 0 : i64, scratch_operands = 0 : i64, tpu.core_type = #tpu.core_type<tc>, window_params = [{pipeline_mode = #tpu.pipeline_mode<synchronous>, transform_indices = @transform_0, window_bounds = array<i64: 2, 8, 32>}, {pipeline_mode = #tpu.pipeline_mode<synchronous>, transform_indices = @transform_1, window_bounds = array<i64: 2, 8, 32>}, {pipeline_mode = #tpu.pipeline_mode<synchronous>, transform_indices = @transform_2, window_bounds = array<i64: 2, 8, 32>}, {pipeline_mode = #tpu.pipeline_mode<synchronous>, transform_indices = @transform_3, window_bounds = array<i64: 32, 128>}, {pipeline_mode = #tpu.pipeline_mode<synchronous>, transform_indices = @transform_4, window_bounds = array<i64: 8, 32>}, {pipeline_mode = #tpu.pipeline_mode<synchronous>, transform_indices = @transform_5, window_bounds = array<i64: 2, 8, 32>}]} {
    %c0 = arith.constant 0 : index
    %c0_0 = arith.constant 0 : index
    %c0_1 = arith.constant 0 : index
    %0 = vector.load %arg1[%c0, %c0_0, %c0_1] : memref<2x8x32xf32, #tpu.memory_space<vmem>>, vector<2x8x32xf32>
    %1 = vector.shape_cast %0 : vector<2x8x32xf32> to vector<16x32xf32>
    %c0_2 = arith.constant 0 : index
    %c0_3 = arith.constant 0 : index
    %c0_4 = arith.constant 0 : index
    %2 = vector.load %arg2[%c0_2, %c0_3, %c0_4] : memref<2x8x32xf32, #tpu.memory_space<vmem>>, vector<2x8x32xf32>
    %3 = vector.shape_cast %2 : vector<2x8x32xf32> to vector<16x32xf32>
    %c0_5 = arith.constant 0 : index
    %c0_6 = arith.constant 0 : index
    %c0_7 = arith.constant 0 : index
    %4 = vector.load %arg3[%c0_5, %c0_6, %c0_7] : memref<2x8x32xf32, #tpu.memory_space<vmem>>, vector<2x8x32xf32>
    %5 = vector.shape_cast %4 : vector<2x8x32xf32> to vector<16x32xf32>
    %c0_8 = arith.constant 0 : index
    %c0_9 = arith.constant 0 : index
    %6 = vector.load %arg4[%c0_8, %c0_9] : memref<32x128xf32, #tpu.memory_space<vmem>>, vector<32x128xf32>
    %c0_10 = arith.constant 0 : index
    %c0_11 = arith.constant 0 : index
    %7 = vector.load %arg5[%c0_10, %c0_11] : memref<8x32xf32, #tpu.memory_space<vmem>>, vector<8x32xf32>
    %8 = tpu.concatenate %1, %3, %5 in 0 : vector<16x32xf32>, vector<16x32xf32>, vector<16x32xf32> -> vector<48x32xf32>
    %9 = vector.extract_strided_slice %6 {offsets = [0, 0], sizes = [32, 96], strides = [1, 1]} : vector<32x128xf32> to vector<32x96xf32>
    %cst = arith.constant dense<0.000000e+00> : vector<48x96xf32>
    %10 = tpu.matmul %8, %9, %cst {dimension_numbers = #tpu.dot_dimension_numbers<[1], [0], [0], [1], [0, 0, 1, 1], [], []>} : vector<48x32xf32>, vector<32x96xf32>, vector<48x96xf32> -> vector<48x96xf32>
    %11 = vector.extract_strided_slice %10 {offsets = [0, 0], sizes = [16, 32], strides = [1, 1]} : vector<48x96xf32> to vector<16x32xf32>
    %12 = vector.extract_strided_slice %7 {offsets = [0, 0], sizes = [1, 32], strides = [1, 1]} : vector<8x32xf32> to vector<1x32xf32>
    %13 = vector.broadcast %12 : vector<1x32xf32> to vector<16x32xf32>
    %14 = arith.addf %11, %13 : vector<16x32xf32>
    %15 = vector.extract_strided_slice %10 {offsets = [16, 32], sizes = [16, 32], strides = [1, 1]} : vector<48x96xf32> to vector<16x32xf32>
    %16 = vector.extract_strided_slice %7 {offsets = [1, 0], sizes = [1, 32], strides = [1, 1]} : vector<8x32xf32> to vector<1x32xf32>
    %17 = vector.broadcast %16 : vector<1x32xf32> to vector<16x32xf32>
    %18 = arith.addf %15, %17 : vector<16x32xf32>
    %19 = vector.extract_strided_slice %10 {offsets = [32, 64], sizes = [16, 32], strides = [1, 1]} : vector<48x96xf32> to vector<16x32xf32>
    %20 = vector.extract_strided_slice %7 {offsets = [2, 0], sizes = [1, 32], strides = [1, 1]} : vector<8x32xf32> to vector<1x32xf32>
    %21 = vector.broadcast %20 : vector<1x32xf32> to vector<16x32xf32>
    %22 = arith.addf %19, %21 : vector<16x32xf32>
    %23 = vector.shape_cast %14 : vector<16x32xf32> to vector<2x8x32xf32>
    %24 = vector.shape_cast %18 : vector<16x32xf32> to vector<2x8x32xf32>
    %25 = vector.shape_cast %22 : vector<16x32xf32> to vector<2x8x32xf32>
    %26 = vector.extract_strided_slice %23 {offsets = [0, 0, 0], sizes = [2, 8, 8], strides = [1, 1, 1]} : vector<2x8x32xf32> to vector<2x8x8xf32>
    %27 = vector.extract_strided_slice %23 {offsets = [0, 0, 8], sizes = [2, 8, 8], strides = [1, 1, 1]} : vector<2x8x32xf32> to vector<2x8x8xf32>
    %28 = vector.extract_strided_slice %23 {offsets = [0, 0, 16], sizes = [2, 8, 8], strides = [1, 1, 1]} : vector<2x8x32xf32> to vector<2x8x8xf32>
    %29 = vector.extract_strided_slice %23 {offsets = [0, 0, 24], sizes = [2, 8, 8], strides = [1, 1, 1]} : vector<2x8x32xf32> to vector<2x8x8xf32>
    %30 = vector.shape_cast %26 : vector<2x8x8xf32> to vector<1x2x8x8xf32>
    %31 = vector.shape_cast %27 : vector<2x8x8xf32> to vector<1x2x8x8xf32>
    %32 = vector.shape_cast %28 : vector<2x8x8xf32> to vector<1x2x8x8xf32>
    %33 = vector.shape_cast %29 : vector<2x8x8xf32> to vector<1x2x8x8xf32>
    %34 = tpu.concatenate %30, %31, %32, %33 in 0 : vector<1x2x8x8xf32>, vector<1x2x8x8xf32>, vector<1x2x8x8xf32>, vector<1x2x8x8xf32> -> vector<4x2x8x8xf32>
    %35 = vector.shape_cast %34 : vector<4x2x8x8xf32> to vector<8x8x8xf32>
    %36 = vector.extract_strided_slice %24 {offsets = [0, 0, 0], sizes = [2, 8, 8], strides = [1, 1, 1]} : vector<2x8x32xf32> to vector<2x8x8xf32>
    %37 = vector.extract_strided_slice %24 {offsets = [0, 0, 8], sizes = [2, 8, 8], strides = [1, 1, 1]} : vector<2x8x32xf32> to vector<2x8x8xf32>
    %38 = vector.extract_strided_slice %24 {offsets = [0, 0, 16], sizes = [2, 8, 8], strides = [1, 1, 1]} : vector<2x8x32xf32> to vector<2x8x8xf32>
    %39 = vector.extract_strided_slice %24 {offsets = [0, 0, 24], sizes = [2, 8, 8], strides = [1, 1, 1]} : vector<2x8x32xf32> to vector<2x8x8xf32>
    %40 = vector.shape_cast %36 : vector<2x8x8xf32> to vector<1x2x8x8xf32>
    %41 = vector.shape_cast %37 : vector<2x8x8xf32> to vector<1x2x8x8xf32>
    %42 = vector.shape_cast %38 : vector<2x8x8xf32> to vector<1x2x8x8xf32>
    %43 = vector.shape_cast %39 : vector<2x8x8xf32> to vector<1x2x8x8xf32>
    %44 = tpu.concatenate %40, %41, %42, %43 in 0 : vector<1x2x8x8xf32>, vector<1x2x8x8xf32>, vector<1x2x8x8xf32>, vector<1x2x8x8xf32> -> vector<4x2x8x8xf32>
    %45 = vector.shape_cast %44 : vector<4x2x8x8xf32> to vector<8x8x8xf32>
    %46 = vector.extract_strided_slice %25 {offsets = [0, 0, 0], sizes = [2, 8, 8], strides = [1, 1, 1]} : vector<2x8x32xf32> to vector<2x8x8xf32>
    %47 = vector.extract_strided_slice %25 {offsets = [0, 0, 8], sizes = [2, 8, 8], strides = [1, 1, 1]} : vector<2x8x32xf32> to vector<2x8x8xf32>
    %48 = vector.extract_strided_slice %25 {offsets = [0, 0, 16], sizes = [2, 8, 8], strides = [1, 1, 1]} : vector<2x8x32xf32> to vector<2x8x8xf32>
    %49 = vector.extract_strided_slice %25 {offsets = [0, 0, 24], sizes = [2, 8, 8], strides = [1, 1, 1]} : vector<2x8x32xf32> to vector<2x8x8xf32>
    %50 = vector.shape_cast %46 : vector<2x8x8xf32> to vector<1x2x8x8xf32>
    %51 = vector.shape_cast %47 : vector<2x8x8xf32> to vector<1x2x8x8xf32>
    %52 = vector.shape_cast %48 : vector<2x8x8xf32> to vector<1x2x8x8xf32>
    %53 = vector.shape_cast %49 : vector<2x8x8xf32> to vector<1x2x8x8xf32>
    %54 = tpu.concatenate %50, %51, %52, %53 in 0 : vector<1x2x8x8xf32>, vector<1x2x8x8xf32>, vector<1x2x8x8xf32>, vector<1x2x8x8xf32> -> vector<4x2x8x8xf32>
    %55 = vector.shape_cast %54 : vector<4x2x8x8xf32> to vector<8x8x8xf32>
    "tpu.trace_start"() <{level = 10 : i32, message = "nqd,nkd->nqk"}> : () -> ()
    %cst_12 = arith.constant dense<0.000000e+00> : vector<8x8x8xf32>
    %56 = tpu.matmul %35, %45, %cst_12 {dimension_numbers = #tpu.dot_dimension_numbers<[2], [2], [1], [1], [0, 0, 0, 1, 1, 1], [0], [0]>} : vector<8x8x8xf32>, vector<8x8x8xf32>, vector<8x8x8xf32> -> vector<8x8x8xf32>
    "tpu.trace_stop"() : () -> ()
    %cst_13 = arith.constant 0.353553385 : f32
    %57 = vector.broadcast %cst_13 : f32 to vector<8x8x8xf32>
    %58 = arith.mulf %56, %57 : vector<8x8x8xf32>
    %59 = vector.shape_cast %58 : vector<8x8x8xf32> to vector<4x2x8x8xf32>
    %60 = vector.extract_strided_slice %59 {offsets = [0, 0, 0, 0], sizes = [1, 2, 8, 8], strides = [1, 1, 1, 1]} : vector<4x2x8x8xf32> to vector<1x2x8x8xf32>
    %61 = vector.shape_cast %60 : vector<1x2x8x8xf32> to vector<2x8x8xf32>
    %62 = vector.extract_strided_slice %59 {offsets = [1, 0, 0, 0], sizes = [1, 2, 8, 8], strides = [1, 1, 1, 1]} : vector<4x2x8x8xf32> to vector<1x2x8x8xf32>
    %63 = vector.shape_cast %62 : vector<1x2x8x8xf32> to vector<2x8x8xf32>
    %64 = arith.maximumf %61, %63 : vector<2x8x8xf32>
    %65 = vector.extract_strided_slice %59 {offsets = [2, 0, 0, 0], sizes = [1, 2, 8, 8], strides = [1, 1, 1, 1]} : vector<4x2x8x8xf32> to vector<1x2x8x8xf32>
    %66 = vector.shape_cast %65 : vector<1x2x8x8xf32> to vector<2x8x8xf32>
    %67 = vector.extract_strided_slice %59 {offsets = [3, 0, 0, 0], sizes = [1, 2, 8, 8], strides = [1, 1, 1, 1]} : vector<4x2x8x8xf32> to vector<1x2x8x8xf32>
    %68 = vector.shape_cast %67 : vector<1x2x8x8xf32> to vector<2x8x8xf32>
    %69 = arith.maximumf %66, %68 : vector<2x8x8xf32>
    %70 = arith.maximumf %64, %69 : vector<2x8x8xf32>
    %71 = vector.shape_cast %70 : vector<2x8x8xf32> to vector<1x2x8x8xf32>
    %72 = vector.broadcast %71 : vector<1x2x8x8xf32> to vector<4x2x8x8xf32>
    %73 = arith.subf %59, %72 : vector<4x2x8x8xf32>
    %74 = math.exp %73 : vector<4x2x8x8xf32>
    %75 = vector.extract_strided_slice %74 {offsets = [0, 0, 0, 0], sizes = [1, 2, 8, 8], strides = [1, 1, 1, 1]} : vector<4x2x8x8xf32> to vector<1x2x8x8xf32>
    %76 = vector.shape_cast %75 : vector<1x2x8x8xf32> to vector<2x8x8xf32>
    %77 = vector.extract_strided_slice %74 {offsets = [1, 0, 0, 0], sizes = [1, 2, 8, 8], strides = [1, 1, 1, 1]} : vector<4x2x8x8xf32> to vector<1x2x8x8xf32>
    %78 = vector.shape_cast %77 : vector<1x2x8x8xf32> to vector<2x8x8xf32>
    %79 = arith.addf %76, %78 : vector<2x8x8xf32>
    %80 = vector.extract_strided_slice %74 {offsets = [2, 0, 0, 0], sizes = [1, 2, 8, 8], strides = [1, 1, 1, 1]} : vector<4x2x8x8xf32> to vector<1x2x8x8xf32>
    %81 = vector.shape_cast %80 : vector<1x2x8x8xf32> to vector<2x8x8xf32>
    %82 = arith.addf %79, %81 : vector<2x8x8xf32>
    %83 = vector.extract_strided_slice %74 {offsets = [3, 0, 0, 0], sizes = [1, 2, 8, 8], strides = [1, 1, 1, 1]} : vector<4x2x8x8xf32> to vector<1x2x8x8xf32>
    %84 = vector.shape_cast %83 : vector<1x2x8x8xf32> to vector<2x8x8xf32>
    %85 = arith.addf %82, %84 : vector<2x8x8xf32>
    %86 = tpu.reciprocal %85 : vector<2x8x8xf32> -> vector<2x8x8xf32>
    %87 = vector.shape_cast %86 : vector<2x8x8xf32> to vector<1x2x8x8xf32>
    %88 = vector.broadcast %87 : vector<1x2x8x8xf32> to vector<4x2x8x8xf32>
    %89 = arith.mulf %74, %88 : vector<4x2x8x8xf32>
    %90 = vector.shape_cast %89 : vector<4x2x8x8xf32> to vector<8x8x8xf32>
    "tpu.trace_start"() <{level = 10 : i32, message = "nqk,nkd->nqd"}> : () -> ()
    %cst_14 = arith.constant dense<0.000000e+00> : vector<8x8x8xf32>
    %91 = tpu.matmul %90, %55, %cst_14 {dimension_numbers = #tpu.dot_dimension_numbers<[2], [1], [1], [2], [0, 0, 0, 1, 1, 2], [0], [0]>} : vector<8x8x8xf32>, vector<8x8x8xf32>, vector<8x8x8xf32> -> vector<8x8x8xf32>
    "tpu.trace_stop"() : () -> ()
    %92 = vector.shape_cast %91 : vector<8x8x8xf32> to vector<4x2x8x8xf32>
    %93 = vector.extract_strided_slice %92 {offsets = [0, 0, 0, 0], sizes = [1, 2, 8, 8], strides = [1, 1, 1, 1]} : vector<4x2x8x8xf32> to vector<1x2x8x8xf32>
    %94 = vector.shape_cast %93 : vector<1x2x8x8xf32> to vector<2x8x8xf32>
    %95 = vector.extract_strided_slice %92 {offsets = [1, 0, 0, 0], sizes = [1, 2, 8, 8], strides = [1, 1, 1, 1]} : vector<4x2x8x8xf32> to vector<1x2x8x8xf32>
    %96 = vector.shape_cast %95 : vector<1x2x8x8xf32> to vector<2x8x8xf32>
    %97 = vector.extract_strided_slice %92 {offsets = [2, 0, 0, 0], sizes = [1, 2, 8, 8], strides = [1, 1, 1, 1]} : vector<4x2x8x8xf32> to vector<1x2x8x8xf32>
    %98 = vector.shape_cast %97 : vector<1x2x8x8xf32> to vector<2x8x8xf32>
    %99 = vector.extract_strided_slice %92 {offsets = [3, 0, 0, 0], sizes = [1, 2, 8, 8], strides = [1, 1, 1, 1]} : vector<4x2x8x8xf32> to vector<1x2x8x8xf32>
    %100 = vector.shape_cast %99 : vector<1x2x8x8xf32> to vector<2x8x8xf32>
    %101 = tpu.concatenate %94, %96, %98, %100 in 2 : vector<2x8x8xf32>, vector<2x8x8xf32>, vector<2x8x8xf32>, vector<2x8x8xf32> -> vector<2x8x32xf32>
    %102 = vector.shape_cast %101 : vector<2x8x32xf32> to vector<16x32xf32>
    %103 = vector.extract_strided_slice %6 {offsets = [0, 96], sizes = [32, 32], strides = [1, 1]} : vector<32x128xf32> to vector<32x32xf32>
    %cst_15 = arith.constant dense<0.000000e+00> : vector<16x32xf32>
    %104 = tpu.matmul %102, %103, %cst_15 {dimension_numbers = #tpu.dot_dimension_numbers<[1], [0], [0], [1], [0, 0, 1, 1], [], []>} : vector<16x32xf32>, vector<32x32xf32>, vector<16x32xf32> -> vector<16x32xf32>
    %105 = vector.extract_strided_slice %7 {offsets = [3, 0], sizes = [1, 32], strides = [1, 1]} : vector<8x32xf32> to vector<1x32xf32>
    %106 = vector.broadcast %105 : vector<1x32xf32> to vector<16x32xf32>
    %107 = arith.addf %104, %106 : vector<16x32xf32>
    %108 = arith.addf %107, %1 : vector<16x32xf32>
    %cst_16 = arith.constant dense<0.000000e+00> : vector<16xf32>
    %109 = vector.multi_reduction <add>, %108, %cst_16 [1] : vector<16x32xf32> to vector<16xf32>
    %110 = vector.shape_cast %109 : vector<16xf32> to vector<16x1xf32>
    %cst_17 = arith.constant 3.200000e+01 : f32
    %111 = vector.broadcast %cst_17 : f32 to vector<16x1xf32>
    %112 = arith.divf %110, %111 : vector<16x1xf32>
    %113 = vector.broadcast %112 : vector<16x1xf32> to vector<16x32xf32>
    %114 = arith.subf %108, %113 : vector<16x32xf32>
    %115 = arith.mulf %114, %114 : vector<16x32xf32>
    %cst_18 = arith.constant dense<0.000000e+00> : vector<16xf32>
    %116 = vector.multi_reduction <add>, %115, %cst_18 [1] : vector<16x32xf32> to vector<16xf32>
    %117 = vector.shape_cast %116 : vector<16xf32> to vector<16x1xf32>
    %cst_19 = arith.constant 3.100000e+01 : f32
    %118 = vector.broadcast %cst_19 : f32 to vector<16x1xf32>
    %119 = arith.divf %117, %118 : vector<16x1xf32>
    %120 = math.sqrt %119 : vector<16x1xf32>
    %121 = vector.extract_strided_slice %7 {offsets = [4, 0], sizes = [1, 32], strides = [1, 1]} : vector<8x32xf32> to vector<1x32xf32>
    %122 = vector.broadcast %121 : vector<1x32xf32> to vector<16x32xf32>
    %123 = arith.mulf %122, %114 : vector<16x32xf32>
    %cst_20 = arith.constant 9.99999997E-7 : f32
    %124 = vector.broadcast %cst_20 : f32 to vector<16x1xf32>
    %125 = arith.addf %120, %124 : vector<16x1xf32>
    %126 = tpu.reciprocal %125 : vector<16x1xf32> -> vector<16x1xf32>
    %127 = vector.broadcast %126 : vector<16x1xf32> to vector<16x32xf32>
    %128 = arith.mulf %123, %127 : vector<16x32xf32>
    %129 = vector.extract_strided_slice %7 {offsets = [5, 0], sizes = [1, 32], strides = [1, 1]} : vector<8x32xf32> to vector<1x32xf32>
    %130 = vector.broadcast %129 : vector<1x32xf32> to vector<16x32xf32>
    %131 = arith.addf %128, %130 : vector<16x32xf32>
    %132 = vector.shape_cast %131 : vector<16x32xf32> to vector<2x8x32xf32>
    %c0_21 = arith.constant 0 : index
    %c0_22 = arith.constant 0 : index
    %c0_23 = arith.constant 0 : index
    %133 = vector.load %arg6[%c0_21, %c0_22, %c0_23] : memref<2x8x32xf32, #tpu.memory_space<vmem>>, vector<2x8x32xf32>
    tpu.vector_store %arg6[%c0_21, %c0_22, %c0_23], %132 {strides = array<i32>} : memref<2x8x32xf32, #tpu.memory_space<vmem>>, vector<2x8x32xf32>,
    return
  }
  func.func @transform_0(%arg0: i32) -> (i32, i32, i32) {
    %c0_i32 = arith.constant 0 : i32
    %c0_i32_0 = arith.constant 0 : i32
    %c0_i32_1 = arith.constant 0 : i32
    %c0_i32_2 = arith.constant 0 : i32
    return %c0_i32, %c0_i32_0, %c0_i32_1 : i32, i32, i32
  }
  func.func @transform_1(%arg0: i32) -> (i32, i32, i32) {
    %c0_i32 = arith.constant 0 : i32
    %c0_i32_0 = arith.constant 0 : i32
    %c0_i32_1 = arith.constant 0 : i32
    %c0_i32_2 = arith.constant 0 : i32
    return %c0_i32, %c0_i32_0, %c0_i32_1 : i32, i32, i32
  }
  func.func @transform_2(%arg0: i32) -> (i32, i32, i32) {
    %c0_i32 = arith.constant 0 : i32
    %c0_i32_0 = arith.constant 0 : i32
    %c0_i32_1 = arith.constant 0 : i32
    %c0_i32_2 = arith.constant 0 : i32
    return %c0_i32, %c0_i32_0, %c0_i32_1 : i32, i32, i32
  }
  func.func @transform_3(%arg0: i32) -> (i32, i32) {
    %c0_i32 = arith.constant 0 : i32
    %c0_i32_0 = arith.constant 0 : i32
    %c0_i32_1 = arith.constant 0 : i32
    return %c0_i32, %c0_i32_0 : i32, i32
  }
  func.func @transform_4(%arg0: i32) -> (i32, i32) {
    %c0_i32 = arith.constant 0 : i32
    %c0_i32_0 = arith.constant 0 : i32
    %c0_i32_1 = arith.constant 0 : i32
    return %c0_i32, %c0_i32_0 : i32, i32
  }
  func.func @transform_5(%arg0: i32) -> (i32, i32, i32) {
    %c0_i32 = arith.constant 0 : i32
    %c0_i32_0 = arith.constant 0 : i32
    %c0_i32_1 = arith.constant 0 : i32
    %c0_i32_2 = arith.constant 0 : i32
    return %c0_i32, %c0_i32_0, %c0_i32_1 : i32, i32, i32
  }
}

</mosaic_0001>

<bundles_post_ra>
// kernel: multi_head_attention.1
= control target key start
LH: loop header
LB: loop body
LE: loop exit
PB: predicated region body
PF: predicated region fallthrough
CT: control target
= control target key end

     0   :  { %10 = vsyncpa [#allocation3], 0  ;;  %s2437_s0 = inlined_call_operand.hbm [shape: f32[2,8,32], index: 0, kind: input, shape index: {}]   ;;  %s2438_s1 = inlined_call_operand.hbm [shape: f32[2,8,32], index: 1, kind: input, shape index: {}]   ;;  %s2439_s2 = inlined_call_operand.hbm [shape: f32[2,8,32], index: 2, kind: input, shape index: {}]   ;;  %s2440_s3 = inlined_call_operand.hbm [shape: f32[32,128], index: 3, kind: input, shape index: {}]   ;;  %s2441_s4 = inlined_call_operand.vmem [shape: f32[8,32], index: 4, kind: input, shape index: {}]   ;;  %s2442_s5 = inlined_call_operand.hbm [shape: f32[2,8,32], index: 5, kind: output, shape index: {}]  }
   0x1   :  { %11 = vsyncpa [#allocation6], 0 }
   0x2   :  { %12 = vsyncpa [#allocation9], 0 }
   0x3   :  { %13 = vsyncpa [#allocation4], 0  ;;  %s2127_s18 = smov [#allocation5]   ;;  %s2128_s20 = smov [#allocation2]  }
   0x4   :  { %s31_s19 = sshll.u32 %s2127_s18, 4  ;;  %s19_s21 = sshll.u32 %s2128_s20, 4  ;;  %s32_s19 = int_to_ptr.vmem [resolvable:$true] %s31_s19  ;;  %s2174_s21 = int_to_ptr.vmem [resolvable:$true] %s19_s21 }
   0x5   :  { %s2009_s24 = scalar_lea.hbm %s2438_s1, 256 }
   0x6   :  { %p2010_p0 = scmp.ne.s32.totalorder %s2438_s1, %s2009_s24  ;;  %p2013_p1 = scmp.lt.u32.totalorder %s2009_s24, %s2438_s1 }
   0x8   :  { %p2015_p2 = pnand %p2013_p1, %p2010_p0 }
   0xa   :  { %2018 = shalt.err (!%p2015_p2)
}
   0xb   :  { %s2019_s29 = scalar_lea.vmem %s32_s19, 256  ;;  %p2024_p4 = scmp.lt.s32.totalorder %s32_s19, %s32_s19 }
   0xc   :  { %p2020_p3 = scmp.ne.s32.totalorder %s32_s19, %s2019_s29  ;;  %p2025_p5 = scmp.lt.s32.totalorder %s2019_s29, %s2019_s29 }
   0xe   :  { %p2026_p6 = por %p2025_p5, %p2024_p4 }
  0x10   :  { %p2027_p7 = pnand %p2026_p6, %p2020_p3 }
  0x12   :  { %2030 = shalt.err (!%p2027_p7)
}
  0x13   :  { %s2129_s30 = smov 128   ;;  %s2130_s6 = smov 8  }
  0x14   :  { %37 = dma.hbm_to_vmem [thread:$0]  %s2438_s1, 256, %s32_s19, [#allocation6], %s2129_s30, %s2129_s30, %s2130_s6  }
  0x15   :  { %s2031_s11 = scalar_lea.hbm %s2437_s0, 256 }
  0x16   :  { %p2032_p8 = scmp.ne.s32.totalorder %s2437_s0, %s2031_s11  ;;  %p2035_p9 = scmp.lt.u32.totalorder %s2031_s11, %s2437_s0 }
  0x18   :  { %p2037_p10 = pnand %p2035_p9, %p2032_p8 }
  0x1a   :  { %2040 = shalt.err (!%p2037_p10)
}
  0x1b   :  { %s2041_s16 = scalar_lea.vmem %s2174_s21, 256  ;;  %p2046_p12 = scmp.lt.s32.totalorder %s2174_s21, %s2174_s21 }
  0x1c   :  { %p2042_p11 = scmp.ne.s32.totalorder %s2174_s21, %s2041_s16  ;;  %p2047_p13 = scmp.lt.s32.totalorder %s2041_s16, %s2041_s16 }
  0x1e   :  { %p2048_p0 = por %p2047_p13, %p2046_p12 }
  0x20   :  { %p2049_p1 = pnand %p2048_p0, %p2042_p11 }
  0x22   :  { %2052 = shalt.err (!%p2049_p1)
}
  0x23   :  { %25 = dma.hbm_to_vmem [thread:$0]  %s2437_s0, 256, %s2174_s21, [#allocation3], %s2129_s30, %s2129_s30, %s2130_s6  }
  0x24   :  { %s2131_s18 = smov [#allocation7]   ;;  %s2132_s20 = smov [#allocation8]  }
  0x25   :  { %s43_s19 = sshll.u32 %s2131_s18, 4  ;;  %s55_s22 = sshll.u32 %s2132_s20, 4  ;;  %s44_s19 = int_to_ptr.vmem [resolvable:$true] %s43_s19  ;;  %s2211_s22 = int_to_ptr.vmem [resolvable:$true] %s55_s22 }
  0x26   :  { %s2053_s25 = scalar_lea.hbm %s2439_s2, 256 }
  0x27   :  { %p2054_p2 = scmp.ne.s32.totalorder %s2439_s2, %s2053_s25  ;;  %p2057_p3 = scmp.lt.u32.totalorder %s2053_s25, %s2439_s2 }
  0x29   :  { %p2059_p4 = pnand %p2057_p3, %p2054_p2 }
  0x2b   :  { %2062 = shalt.err (!%p2059_p4)
}
  0x2c   :  { %s2063_s0 = scalar_lea.vmem %s44_s19, 256  ;;  %p2068_p6 = scmp.lt.s32.totalorder %s44_s19, %s44_s19 }
  0x2d   :  { %p2064_p5 = scmp.ne.s32.totalorder %s44_s19, %s2063_s0  ;;  %p2069_p7 = scmp.lt.s32.totalorder %s2063_s0, %s2063_s0 }
  0x2f   :  { %p2070_p8 = por %p2069_p7, %p2068_p6 }
  0x31   :  { %p2071_p9 = pnand %p2070_p8, %p2064_p5 }
  0x33   :  { %2074 = shalt.err (!%p2071_p9)
}
  0x34   :  { %49 = dma.hbm_to_vmem [thread:$0]  %s2439_s2, 256, %s44_s19, [#allocation6], %s2129_s30, %s2129_s30, %s2130_s6  }
  0x35   :  { %s2075_s10 = scalar_lea.hbm %s2440_s3, 512 }
  0x36   :  { %p2076_p10 = scmp.ne.s32.totalorder %s2440_s3, %s2075_s10  ;;  %p2079_p11 = scmp.lt.u32.totalorder %s2075_s10, %s2440_s3 }
  0x38   :  { %p2081_p12 = pnand %p2079_p11, %p2076_p10 }
  0x3a   :  { %2084 = shalt.err (!%p2081_p12)
}
  0x3b   :  { %s2085_s15 = scalar_lea.vmem %s2211_s22, 512  ;;  %p2090_p0 = scmp.lt.s32.totalorder %s2211_s22, %s2211_s22 }
  0x3c   :  { %p2086_p13 = scmp.ne.s32.totalorder %s2211_s22, %s2085_s15  ;;  %p2091_p1 = scmp.lt.s32.totalorder %s2085_s15, %s2085_s15 }
  0x3e   :  { %p2092_p2 = por %p2091_p1, %p2090_p0 }
  0x40   :  { %p2093_p3 = pnand %p2092_p2, %p2086_p13 }
  0x42   :  { %2096 = shalt.err (!%p2093_p3)
}
  0x43   :  { %61 = dma.hbm_to_vmem [thread:$0]  %s2440_s3, 512, %s2211_s22, [#allocation9], %s2129_s30, %s2129_s30, %s2130_s6  }
  0x44   :  { %2119 = dma.done.wait [#allocation3], 256  }
  0x45   :  { %2120 = vsyncadd [#allocation3], 4294967040 }
  0x46   :  { %2121 = dma.done.wait [#allocation6], 512  }
  0x47   :  { %2122 = vsyncadd [#allocation6], 4294966784 }
  0x48   :  { %2123 = dma.done.wait [#allocation9], 512  }
  0x49   :  { %2124 = vsyncadd [#allocation9], 4294966784  ;;  %v201_v0 = vlaneseq  ;;  %vm87_vm0 = vcmask 261120   ;;  %v2251_v3 = vld [vmem:[#allocation8] sm:$0xff]  ;;  %v2253_v4 = vld [vmem:[#allocation8 + $0x8] sm:$0xff]  ;;  %s2133_s17 = smov 32  }
  0x4a   :  { %v2255_v5 = vld [vmem:[#allocation8 + $0x10] sm:$0xff]  ;;  %v1971_v6 = vpack.i.bf16 %v2253_v4, %v2251_v3  ;;  %v1938_v7 = vpack.c.bf16 %v2253_v4, %v2251_v3  ;;  %v2261_v8 = vld [vmem:[#allocation8 + $0x18] sm:$0xff]  ;;  %v78_v14 = vld [vmem:[#allocation5] sm:$0xff]  ;;  %v2134_v22 = vmov 0.0   ;;  %vm2136_vm1 = vmmov 0   ;;  %s2137_s18 = smov 112  }
  0x4b   :  { %v2248_v1 = vshrl.u32 %v201_v0, 7  ;;  %v2263_v9 = vld [vmem:[#allocation2] sm:$0xff]  ;;  %v1942_v10 = vpack.c.bf16 %v2261_v8, %v2255_v5  ;;  %v2276_v13 = vld [vmem:[#allocation2 + $0x8] sm:$0xff]  ;;  %v79_v15 = vld [vmem:[#allocation5 + $0x8] sm:$0xff]  ;;  %1847 = vmatprep.subr.mxu1 %v2134_v22  ;;  %1849 = vmatprep.mubr.msk.f32.mxu1 %vm2136_vm1, %v2134_v22  ;;  %s2138_s19 = smov 104   ;;  %s2139_s20 = smov 96  }
  0x4c   :  { %1838 = vmatprep.mubr.msk.f32.mxu0 %vm87_vm0, %v2263_v9  ;;  %v2272_v11 = vld [vmem:[%s2441_s4] sm:$0xff]  ;;  %1939 = vmatprep.subr.bf16.mxu0 %v1938_v7  ;;  %v81_v17 = vld [vmem:[#allocation7 + $0x8] sm:$0xff]  ;;  %s2135_s4 = smov 120   ;;  %vm271_vm2 = vcmask 64512   ;;  %s2140_s22 = smov 64   ;;  %vm1566_vm3 = vcmask 130048  }
  0x4d   :  { %v209_v2 = vsub.s32 1, %v2248_v1  ;;  %1941 = vmatpush3.bf16.msra.mxu0 %v1938_v7  ;;  %v80_v16 = vld [vmem:[#allocation7] sm:$0xff]  ;;  %v203_v26 = vsub.s32 0, %v2248_v1  ;;  %v219_v40 = vsub.s32 2, %v2248_v1  ;;  %s2141_s23 = smov 16   ;;  %s2142_s24 = smov 24  }
  0x4e   :  { %1943 = vmatprep.subr.bf16.mxu0 %v1942_v10  ;;  %vm1569_vm4 = vcmask 195584   ;;  %s2143_s25 = smov [#allocation10]  }
  0x4f   :  { %v210_v12 = vrot.slane %v2272_v11, %v209_v2  ;;  %v204_v27 = vrot.slane %v2272_v11, %v203_v26  ;;  %v220_v41 = vrot.slane %v2272_v11, %v219_v40  ;;  %s1736_s26 = sshll.u32 %s2143_s25, 4  ;;  %s1737_s26 = int_to_ptr.vmem [resolvable:$true] %s1736_s26 }
  0x50   :  { %s2097_s27 = scalar_lea.vmem %s1737_s26, 256  ;;  %p2102_p5 = scmp.lt.s32.totalorder %s1737_s26, %s1737_s26 }
  0x51   :  { %212 = vrot.lane.b32.xlu0 %v210_v12, %s2133_s17  ;;  %1945 = vmatpush3.bf16.msra.mxu0 %v1942_v10  ;;  %p2098_p4 = scmp.ne.s32.totalorder %s1737_s26, %s2097_s27  ;;  %p2103_p6 = scmp.lt.s32.totalorder %s2097_s27, %s2097_s27 }
  0x52   :  { %1877 = vmatprep.subr.mxu0 %v2134_v22 }
  0x53   :  { %p2104_p7 = por %p2103_p6, %p2102_p5 }
  0x54   :  { %1839 = vmatmul.mubr.msk.f32.vlgmr.msra.gmra.mrb[0].mxu0 %vm87_vm0, %v2276_v13 }
  0x55   :  { %1841 = vmatprep.mubr.msk.f32.mxu0 %vm87_vm0, %v78_v14  ;;  %p2105_p8 = pnand %p2104_p7, %p2098_p4 }
  0x58   :  { %1842 = vmatmul.mubr.msk.f32.gmra.mrb[2].mxu0 %vm87_vm0, %v79_v15 }
  0x59   :  { %1844 = vmatprep.mubr.msk.f32.mxu0 %vm87_vm0, %v80_v16 }
  0x5c   :  { %1845 = vmatmul.mubr.msk.f32.gmra.mrb[4].mxu0 %vm87_vm0, %v81_v17 }
  0x5d   :  { %1879 = vmatprep.mubr.msk.f32.mxu0 %vm2136_vm1, %v2134_v22 }
  0xc3   :  { %v213_v20 = vpop.permute.xlu0 %212 }
 0x127   :  { %v1840_v18 = vpop.f32.mrb[0].mxu0 }
 0x128   :  { %v172_v19 = vpop.f32.mrb[1].mxu0  ;;  %v206_v29 = vadd.f32 %v1840_v18, %v204_v27 }
 0x129   :  { %v205_v28 = vadd.f32 %v204_v27, %v172_v19 }
 0x12b   :  { %v1843_v21 = vpop.f32.mrb[2].mxu0 }
 0x12c   :  { %v216_v23 = vadd.f32 %v1843_v21, %v213_v20  ;;  %v182_v24 = vpop.f32.mrb[3].mxu0 }
 0x12d   :  { %v215_v25 = vadd.f32 %v213_v20, %v182_v24 }
 0x12e   :  { %245 = vrot.lane.b32.xlu1 %v216_v23, %s2135_s4 }
 0x12f   :  { %243 = vrot.lane.b32.xlu0 %v215_v25, %s2135_s4  ;;  %v1846_v36 = vpop.f32.mrb[4].mxu0 }
 0x130   :  { %v192_v38 = vpop.f32.mrb[5].mxu0 }
 0x132   :  { %247 = vrot.lane.b32.xlu1 %v215_v25, %s2137_s18 }
 0x133   :  { %249 = vrot.lane.b32.xlu0 %v216_v23, %s2137_s18 }
 0x136   :  { %251 = vrot.lane.b32.xlu1 %v215_v25, %s2138_s19 }
 0x137   :  { %253 = vrot.lane.b32.xlu0 %v216_v23, %s2138_s19 }
 0x13a   :  { %269 = vrot.lane.b32.xlu1 %v215_v25, %s2139_s20 }
 0x13b   :  { %346 = vrot.lane.b32.xlu0 %v216_v23, %s2139_s20 }
 0x13f   :  { %229 = vrot.lane.b32.xlu0 %v205_v28, %s2135_s4 }
 0x143   :  { %231 = vrot.lane.b32.xlu0 %v206_v29, %s2135_s4 }
 0x147   :  { %233 = vrot.lane.b32.xlu0 %v205_v28, %s2137_s18 }
 0x14b   :  { %235 = vrot.lane.b32.xlu0 %v206_v29, %s2137_s18 }
 0x1a0   :  { %v246_v30 = vpop.permute.xlu1 %245 }
 0x1a1   :  { %v244_v31 = vpop.permute.xlu0 %243 }
 0x1a2   :  { %422 = vrot.lane.b32.xlu1 %v244_v31, %s2139_s20 }
 0x1a4   :  { %v248_v32 = vpop.permute.xlu1 %247 }
 0x1a5   :  { %v250_v33 = vpop.permute.xlu0 %249 }
 0x1a6   :  { %498 = vrot.lane.b32.xlu1 %v246_v30, %s2139_s20 }
 0x1a8   :  { %v252_v34 = vpop.permute.xlu1 %251 }
 0x1a9   :  { %v254_v35 = vpop.permute.xlu0 %253 }
 0x1aa   :  { %574 = vrot.lane.b32.xlu1 %v248_v32, %s2139_s20  ;;  %802 = vrot.lane.b32.xlu0 %v254_v35, %s2139_s20 }
 0x1ac   :  { %v270_v37 = vpop.permute.xlu1 %269 }
 0x1ad   :  { %1848 = vmatpush3.xpose.msk.msra.mxu1 %vm271_vm2, %v270_v37  ;;  %v347_v39 = vpop.permute.xlu0 %346 }
 0x1ae   :  { %650 = vrot.lane.b32.xlu1 %v250_v33, %s2139_s20  ;;  %239 = vrot.lane.b32.xlu0 %v206_v29, %s2138_s19 }
 0x1af   :  { %1852 = vmatprep.subr.mxu1 %v2134_v22 }
 0x1b0   :  { %1850 = vmatmul.mubr.msk.f32.vlgmr.msra.gmra.mrb[0].mxu1 %vm271_vm2, %v205_v28 }
 0x1b1   :  { %1853 = vmatpush3.xpose.msk.msra.mxu1 %vm271_vm2, %v347_v39  ;;  %1854 = vmatprep.mubr.msk.f32.mxu1 %vm2136_vm1, %v2134_v22  ;;  %v230_v42 = vpop.permute.xlu0 %229 }
 0x1b2   :  { %726 = vrot.lane.b32.xlu1 %v252_v34, %s2139_s20  ;;  %1857 = vmatprep.subr.mxu1 %v2134_v22 }
 0x1b4   :  { %1855 = vmatmul.mubr.msk.f32.vlgmr.msra.gmra.mrb[2].mxu1 %vm271_vm2, %v206_v29 }
 0x1b5   :  { %1859 = vmatprep.mubr.msk.f32.mxu1 %vm2136_vm1, %v2134_v22  ;;  %v232_v43 = vpop.permute.xlu0 %231 }
 0x1b6   :  { %237 = vrot.lane.b32.xlu1 %v205_v28, %s2138_s19 }
 0x1b9   :  { %v234_v45 = vpop.permute.xlu0 %233 }
 0x1ba   :  { %222 = vrot.lane.b32.xlu1 %v220_v41, %s2140_s22 }
 0x1bd   :  { %v236_v48 = vpop.permute.xlu0 %235 }
 0x214   :  { %v423_v44 = vpop.permute.xlu1 %422 }
 0x215   :  { %1858 = vmatpush3.xpose.msk.msra.mxu1 %vm271_vm2, %v423_v44 }
 0x216   :  { %1862 = vmatprep.subr.mxu1 %v2134_v22 }
 0x218   :  { %v499_v46 = vpop.permute.xlu1 %498  ;;  %1860 = vmatmul.mubr.msk.f32.vlgmr.msra.gmra.mrb[4].mxu1 %vm271_vm2, %v230_v42 }
 0x219   :  { %1863 = vmatpush3.xpose.msk.msra.mxu1 %vm271_vm2, %v499_v46  ;;  %1864 = vmatprep.mubr.msk.f32.mxu1 %vm2136_vm1, %v2134_v22 }
 0x21a   :  { %1867 = vmatprep.subr.mxu1 %v2134_v22 }
 0x21c   :  { %v575_v47 = vpop.permute.xlu1 %574  ;;  %1865 = vmatmul.mubr.msk.f32.vlgmr.msra.gmra.mrb[6].mxu1 %vm271_vm2, %v232_v43  ;;  %v803_v50 = vpop.permute.xlu0 %802 }
 0x21d   :  { %1868 = vmatpush3.xpose.msk.msra.mxu1 %vm271_vm2, %v575_v47  ;;  %1869 = vmatprep.mubr.msk.f32.mxu1 %vm2136_vm1, %v2134_v22 }
 0x21e   :  { %1872 = vmatprep.subr.mxu1 %v2134_v22 }
 0x220   :  { %v651_v49 = vpop.permute.xlu1 %650  ;;  %1870 = vmatmul.mubr.msk.f32.vlgmr.msra.gmra.mrb[8].mxu1 %vm271_vm2, %v234_v45  ;;  %v240_v52 = vpop.permute.xlu0 %239 }
 0x221   :  { %1873 = vmatpush3.xpose.msk.msra.mxu1 %vm271_vm2, %v651_v49  ;;  %1874 = vmatprep.mubr.msk.f32.mxu1 %vm2136_vm1, %v2134_v22 }
 0x222   :  { %1882 = vmatprep.subr.mxu1 %v2134_v22 }
 0x224   :  { %v727_v51 = vpop.permute.xlu1 %726  ;;  %1875 = vmatmul.mubr.msk.f32.vlgmr.msra.gmra.mrb[10].mxu1 %vm271_vm2, %v236_v48 }
 0x225   :  { %1878 = vmatpush3.xpose.msk.msra.mxu0 %vm271_vm2, %v727_v51  ;;  %1883 = vmatpush3.xpose.msk.msra.mxu1 %vm271_vm2, %v803_v50 }
 0x226   :  { %1884 = vmatprep.mubr.msk.f32.mxu1 %vm2136_vm1, %v2134_v22  ;;  %1887 = vmatprep.subr.mxu0 %v2134_v22 }
 0x227   :  { %1892 = vmatprep.subr.mxu1 %v2134_v22 }
 0x228   :  { %v238_v53 = vpop.permute.xlu1 %237  ;;  %1885 = vmatmul.mubr.msk.f32.vlgmr.msra.gmra.mrb[12].mxu1 %vm271_vm2, %v240_v52 }
 0x229   :  { %1880 = vmatmul.mubr.msk.f32.vlgmr.msra.gmra.mrb[6].mxu0 %vm271_vm2, %v238_v53  ;;  %1894 = vmatprep.mubr.msk.f32.mxu1 %vm2136_vm1, %v2134_v22 }
 0x22a   :  { %1889 = vmatprep.mubr.msk.f32.mxu0 %vm2136_vm1, %v2134_v22 }
 0x22c   :  { %v223_v54 = vpop.permute.xlu1 %222 }
 0x22d   :  { %v226_v55 = vadd.f32 %v1846_v36, %v223_v54  ;;  %v225_v56 = vadd.f32 %v223_v54, %v192_v38 }
 0x22f   :  { %259 = vrot.lane.b32.xlu1 %v226_v55, %s2135_s4  ;;  %257 = vrot.lane.b32.xlu0 %v225_v56, %s2135_s4 }
 0x233   :  { %263 = vrot.lane.b32.xlu1 %v226_v55, %s2137_s18  ;;  %261 = vrot.lane.b32.xlu0 %v225_v56, %s2137_s18 }
 0x237   :  { %267 = vrot.lane.b32.xlu1 %v226_v55, %s2138_s19  ;;  %265 = vrot.lane.b32.xlu0 %v225_v56, %s2138_s19 }
 0x23b   :  { %1008 = vrot.lane.b32.xlu1 %v226_v55, %s2140_s22  ;;  %932 = vrot.lane.b32.xlu0 %v225_v56, %s2140_s22 }
 0x283   :  { %v342_v57 = vpop.f32.mrb[0].mxu1 }
 0x284   :  { %v1851_v58 = vpop.f32.mrb[1].mxu1  ;;  %v878_v15 = vmul.f32 0.35355338, %v342_v57 }
 0x287   :  { %v418_v59 = vpop.f32.mrb[2].mxu1 }
 0x288   :  { %v1856_v60 = vpop.f32.mrb[3].mxu1  ;;  %v879_v20 = vmul.f32 0.35355338, %v418_v59 }
 0x2a1   :  { %v260_v61 = vpop.permute.xlu1 %259  ;;  %v258_v62 = vpop.permute.xlu0 %257 }
 0x2a2   :  { %1160 = vrot.lane.b32.xlu1 %v260_v61, %s2140_s22  ;;  %1084 = vrot.lane.b32.xlu0 %v258_v62, %s2140_s22 }
 0x2a5   :  { %v264_v63 = vpop.permute.xlu1 %263  ;;  %v262_v0 = vpop.permute.xlu0 %261 }
 0x2a6   :  { %1312 = vrot.lane.b32.xlu1 %v264_v63, %s2140_s22  ;;  %1236 = vrot.lane.b32.xlu0 %v262_v0, %s2140_s22 }
 0x2a9   :  { %v268_v2 = vpop.permute.xlu1 %267  ;;  %v266_v7 = vpop.permute.xlu0 %265 }
 0x2aa   :  { %1464 = vrot.lane.b32.xlu1 %v268_v2, %s2140_s22  ;;  %1388 = vrot.lane.b32.xlu0 %v266_v7, %s2140_s22 }
 0x2ad   :  { %v1009_v10 = vpop.permute.xlu1 %1008  ;;  %v933_v12 = vpop.permute.xlu0 %932 }
 0x2ae   :  { %1893 = vmatpush3.msra.mxu1 %v1009_v10  ;;  %1888 = vmatpush3.msra.mxu0 %v933_v12 }
 0x2af   :  { %1902 = vmatprep.subr.mxu1 %v2134_v22  ;;  %1897 = vmatprep.subr.mxu0 %v2134_v22 }
 0x2b0   :  { %1972 = vrot.lane.b32.xlu0 %v1971_v6, %s2133_s17 }
 0x2eb   :  { %v494_v14 = vpop.f32.mrb[4].mxu1 }
 0x2ec   :  { %v880_v16 = vmul.f32 0.35355338, %v494_v14  ;;  %v1861_v17 = vpop.f32.mrb[5].mxu1 }
 0x2ee   :  { %v886_v18 = vmax.f32 %v878_v15, %v880_v16 }
 0x2ef   :  { %v570_v19 = vpop.f32.mrb[6].mxu1 }
 0x2f0   :  { %v881_v21 = vmul.f32 0.35355338, %v570_v19  ;;  %v1866_v23 = vpop.f32.mrb[7].mxu1 }
 0x2f2   :  { %v887_v24 = vmax.f32 %v879_v20, %v881_v21 }
 0x2f3   :  { %v646_v25 = vpop.f32.mrb[8].mxu1 }
 0x2f4   :  { %v1871_v26 = vpop.f32.mrb[9].mxu1  ;;  %v882_v4 = vmul.f32 0.35355338, %v646_v25 }
 0x2f7   :  { %v722_v27 = vpop.f32.mrb[10].mxu1 }
 0x2f8   :  { %v1876_v28 = vpop.f32.mrb[11].mxu1  ;;  %v883_v30 = vmul.f32 0.35355338, %v722_v27 }
 0x2fb   :  { %v874_v29 = vpop.f32.mrb[12].mxu1 }
 0x2fc   :  { %v885_v31 = vmul.f32 0.35355338, %v874_v29  ;;  %v798_v32 = vpop.f32.mrb[6].mxu0  ;;  %v1886_v3 = vpop.f32.mrb[13].mxu1 }
 0x2fd   :  { %v884_v6 = vmul.f32 0.35355338, %v798_v32  ;;  %v1881_v33 = vpop.f32.mrb[7].mxu0 }
 0x2fe   :  { %v889_v34 = vmax.f32 %v883_v30, %v885_v31 }
 0x2ff   :  { %v888_v35 = vmax.f32 %v882_v4, %v884_v6 }
 0x300   :  { %v891_v36 = vmax.f32 %v887_v24, %v889_v34 }
 0x301   :  { %v890_v37 = vmax.f32 %v886_v18, %v888_v35 }
 0x302   :  { %v893_v38 = vsub.f32 %v879_v20, %v891_v36  ;;  %v895_v39 = vsub.f32 %v881_v21, %v891_v36  ;;  %v897_v40 = vsub.f32 %v883_v30, %v891_v36  ;;  %v899_v41 = vsub.f32 %v885_v31, %v891_v36 }
 0x303   :  { %v892_v42 = vsub.f32 %v878_v15, %v890_v37  ;;  %v894_v43 = vsub.f32 %v880_v16, %v890_v37  ;;  %v896_v44 = vsub.f32 %v882_v4, %v890_v37  ;;  %v898_v45 = vsub.f32 %v884_v6, %v890_v37 }
 0x304   :  { %v902_v46 = vmul.f32 1.442695, %v893_v38  ;;  %v906_v47 = vmul.f32 1.442695, %v895_v39  ;;  %v910_v48 = vmul.f32 1.442695, %v897_v40  ;;  %v1976_v30 = vpack.i.bf16 %v2261_v8, %v2255_v5 }
 0x305   :  { %v914_v49 = vmul.f32 1.442695, %v899_v41  ;;  %v900_v50 = vmul.f32 1.442695, %v892_v42  ;;  %v904_v51 = vmul.f32 1.442695, %v894_v43 }
 0x306   :  { %1981 = vpow2.f32 %v902_v46  ;;  %v908_v52 = vmul.f32 1.442695, %v896_v44  ;;  %v912_v53 = vmul.f32 1.442695, %v898_v45  ;;  %1977 = vrot.lane.b32.xlu1 %v1976_v30, %s2133_s17 }
 0x307   :  { %1983 = vpow2.f32 %v906_v47 }
 0x308   :  { %1985 = vpow2.f32 %v910_v48 }
 0x309   :  { %1987 = vpow2.f32 %v914_v49 }
 0x30a   :  { %1989 = vpow2.f32 %v900_v50 }
 0x30b   :  { %1991 = vpow2.f32 %v904_v51 }
 0x30c   :  { %1993 = vpow2.f32 %v908_v52 }
 0x30d   :  { %1995 = vpow2.f32 %v912_v53 }
 0x310   :  { %v1982_v54 = vpop.eup %1981 }
 0x311   :  { %v1984_v55 = vpop.eup %1983 }
 0x312   :  { %v1986_v56 = vpop.eup %1985  ;;  %v917_v57 = vadd.f32 %v1984_v55, %v1982_v54 }
 0x313   :  { %v1988_v58 = vpop.eup %1987 }
 0x314   :  { %v1990_v59 = vpop.eup %1989  ;;  %v919_v60 = vadd.f32 %v1986_v56, %v917_v57  ;;  %v1161_v14 = vpop.permute.xlu1 %1160 }
 0x315   :  { %v1992_v61 = vpop.eup %1991  ;;  %v1085_v19 = vpop.permute.xlu0 %1084 }
 0x316   :  { %v921_v62 = vadd.f32 %v1988_v58, %v919_v60  ;;  %v916_v63 = vadd.f32 %v1992_v61, %v1990_v59  ;;  %v1994_v0 = vpop.eup %1993 }
 0x317   :  { %v1996_v7 = vpop.eup %1995 }
 0x318   :  { %1997 = vrcp.f32 %v921_v62  ;;  %v918_v2 = vadd.f32 %v1994_v0, %v916_v63  ;;  %v1313_v26 = vpop.permute.xlu1 %1312 }
 0x319   :  { %v1237_v27 = vpop.permute.xlu0 %1236 }
 0x31a   :  { %v920_v10 = vadd.f32 %v1996_v7, %v918_v2 }
 0x31c   :  { %1999 = vrcp.f32 %v920_v10  ;;  %v1465_v28 = vpop.permute.xlu1 %1464 }
 0x31d   :  { %v1389_v29 = vpop.permute.xlu0 %1388 }
 0x322   :  { %v1998_v12 = vpop.eup %1997  ;;  %v1973_v31 = vpop.permute.xlu0 %1972 }
 0x323   :  { %v925_v15 = vmul.f32 %v1998_v12, %v1982_v54  ;;  %v927_v16 = vmul.f32 %v1998_v12, %v1984_v55  ;;  %v929_v17 = vmul.f32 %v1998_v12, %v1986_v56  ;;  %v931_v18 = vmul.f32 %v1998_v12, %v1988_v58 }
 0x324   :  { %v1975_v32 = vunpack.i.h.bf16 %v1973_v31  ;;  %v1974_v3 = vunpack.i.l.bf16 %v1973_v31 }
 0x325   :  { %1895 = vmatmul.mubr.msk.f32.vlgmr.msra.gmra.mrb[14].mxu1 %vm271_vm2, %v925_v15 }
 0x326   :  { %v2000_v20 = vpop.eup %1999  ;;  %1903 = vmatpush3.msra.mxu1 %v1161_v14  ;;  %1904 = vmatprep.mubr.msk.f32.mxu1 %vm2136_vm1, %v2134_v22  ;;  %v1946_v4 = vpack.c.bf16 %v1975_v32, %v1974_v3 }
 0x327   :  { %v924_v21 = vmul.f32 %v2000_v20, %v1990_v59  ;;  %v926_v23 = vmul.f32 %v2000_v20, %v1992_v61  ;;  %1912 = vmatprep.subr.mxu1 %v2134_v22  ;;  %v928_v24 = vmul.f32 %v2000_v20, %v1994_v0  ;;  %v930_v25 = vmul.f32 %v2000_v20, %v1996_v7 }
 0x328   :  { %v1574_v61 = vsub.s32 3, %v2248_v1 }
 0x329   :  { %1890 = vmatmul.mubr.msk.f32.vlgmr.msra.gmra.mrb[8].mxu0 %vm271_vm2, %v924_v21  ;;  %1905 = vmatmul.mubr.msk.f32.vlgmr.msra.gmra.mrb[16].mxu1 %vm271_vm2, %v927_v16 }
 0x32a   :  { %1898 = vmatpush3.msra.mxu0 %v1085_v19  ;;  %1899 = vmatprep.mubr.msk.f32.mxu0 %vm2136_vm1, %v2134_v22  ;;  %v1575_v62 = vrot.slane %v2272_v11, %v1574_v61 }
 0x32b   :  { %1907 = vmatprep.subr.mxu0 %v2134_v22  ;;  %1913 = vmatpush3.msra.mxu1 %v1313_v26 }
 0x32c   :  { %1914 = vmatprep.mubr.msk.f32.mxu1 %vm2136_vm1, %v2134_v22  ;;  %1922 = vmatprep.subr.mxu1 %v2134_v22 }
 0x32d   :  { %1900 = vmatmul.mubr.msk.f32.vlgmr.msra.gmra.mrb[10].mxu0 %vm271_vm2, %v926_v23  ;;  %1915 = vmatmul.mubr.msk.f32.vlgmr.msra.gmra.mrb[18].mxu1 %vm271_vm2, %v929_v17 }
 0x32e   :  { %1908 = vmatpush3.msra.mxu0 %v1237_v27  ;;  %1909 = vmatprep.mubr.msk.f32.mxu0 %vm2136_vm1, %v2134_v22 }
 0x32f   :  { %1917 = vmatprep.subr.mxu0 %v2134_v22  ;;  %1923 = vmatpush3.msra.mxu1 %v1465_v28 }
 0x330   :  { %1924 = vmatprep.mubr.msk.f32.mxu1 %vm2136_vm1, %v2134_v22 }
 0x331   :  { %1910 = vmatmul.mubr.msk.f32.vlgmr.msra.gmra.mrb[12].mxu0 %vm271_vm2, %v928_v24  ;;  %1925 = vmatmul.mubr.msk.f32.vlgmr.msra.gmra.mrb[20].mxu1 %vm271_vm2, %v931_v18 }
 0x332   :  { %1918 = vmatpush3.msra.mxu0 %v1389_v29  ;;  %1919 = vmatprep.mubr.msk.f32.mxu0 %vm2136_vm1, %v2134_v22 }
 0x333   :  { %1947 = vmatprep.subr.bf16.mxu0 %v1946_v4 }
 0x335   :  { %1920 = vmatmul.mubr.msk.f32.vlgmr.msra.gmra.mrb[14].mxu0 %vm271_vm2, %v930_v25 }
 0x336   :  { %1949 = vmatpush3.bf16.msra.mxu0 %v1946_v4 }
 0x378   :  { %v1978_v6 = vpop.permute.xlu1 %1977 }
 0x379   :  { %v1980_v33 = vunpack.i.h.bf16 %v1978_v6  ;;  %v1979_v34 = vunpack.i.l.bf16 %v1978_v6 }
 0x37b   :  { %v1950_v35 = vpack.c.bf16 %v1980_v33, %v1979_v34 }
 0x37d   :  { %1951 = vmatprep.subr.bf16.mxu0 %v1950_v35 }
 0x37e   :  { %1953 = vmatpush3.bf16.msra.mxu0 %v1950_v35 }
 0x3f8   :  { %v1080_v22 = vpop.f32.mrb[14].mxu1 }
 0x3f9   :  { %v1896_v36 = vpop.f32.mrb[15].mxu1 }
 0x3fc   :  { %v1004_v37 = vpop.f32.mrb[8].mxu0  ;;  %v1232_v38 = vpop.f32.mrb[16].mxu1 }
 0x3fd   :  { %v1891_v39 = vpop.f32.mrb[9].mxu0  ;;  %1544 = vrot.lane.b32.xlu1 %v1232_v38, %s2130_s6  ;;  %v1906_v5 = vpop.f32.mrb[17].mxu1 }
 0x3fe   :  { %v1725_v39 = vsub.s32 5, %v2248_v1 }
 0x400   :  { %v1156_v8 = vpop.f32.mrb[10].mxu0  ;;  %v1384_v40 = vpop.f32.mrb[18].mxu1 }
 0x401   :  { %1542 = vrot.lane.b32.xlu0 %v1156_v8, %s2130_s6  ;;  %v1901_v41 = vpop.f32.mrb[11].mxu0  ;;  %1552 = vrot.lane.b32.xlu1 %v1384_v40, %s2141_s23  ;;  %v1916_v42 = vpop.f32.mrb[19].mxu1  ;;  %v1726_v8 = vrot.slane %v2272_v11, %v1725_v39 }
 0x404   :  { %v1308_v43 = vpop.f32.mrb[12].mxu0  ;;  %v1536_v44 = vpop.f32.mrb[20].mxu1 }
 0x405   :  { %1550 = vrot.lane.b32.xlu0 %v1308_v43, %s2141_s23  ;;  %v1911_v45 = vpop.f32.mrb[13].mxu0  ;;  %1560 = vrot.lane.b32.xlu1 %v1536_v44, %s2142_s24  ;;  %v1926_v46 = vpop.f32.mrb[21].mxu1 }
 0x408   :  { %v1460_v47 = vpop.f32.mrb[14].mxu0 }
 0x409   :  { %1558 = vrot.lane.b32.xlu0 %v1460_v47, %s2142_s24  ;;  %v1921_v48 = vpop.f32.mrb[15].mxu0 }
 0x46f   :  { %v1545_v49 = vpop.permute.xlu1 %1544 }
 0x470   :  { %v1565_v55 = vsel %vm271_vm2, %v1080_v22, %v1545_v49  ;;  %v1713_v22 = vsub.s32 4, %v2248_v1 }
 0x472   :  { %v1714_v38 = vrot.slane %v2272_v11, %v1713_v22 }
 0x473   :  { %v1543_v50 = vpop.permute.xlu0 %1542  ;;  %v1553_v51 = vpop.permute.xlu1 %1552 }
 0x474   :  { %v1564_v53 = vsel %vm271_vm2, %v1004_v37, %v1543_v50  ;;  %v1568_v58 = vsel %vm1566_vm3, %v1565_v55, %v1553_v51 }
 0x477   :  { %v1551_v52 = vpop.permute.xlu0 %1550  ;;  %v1561_v54 = vpop.permute.xlu1 %1560 }
 0x478   :  { %v1567_v56 = vsel %vm1566_vm3, %v1564_v53, %v1551_v52  ;;  %v1571_v60 = vsel %vm1569_vm4, %v1568_v58, %v1561_v54 }
 0x47b   :  { %v1559_v57 = vpop.permute.xlu0 %1558 }
 0x47c   :  { %v1570_v59 = vsel %vm1569_vm4, %v1567_v56, %v1559_v57 }
 0x47d   :  { %1935 = vmatprep.mubr.msk.f32.mxu0 %vm87_vm0, %v1570_v59 }
 0x47e   :  { %1936 = vmatmul.mubr.msk.f32.vlgmr.msra.gmra.mrb[16].mxu0 %vm87_vm0, %v1571_v60 }
 0x551   :  { %v1937_v63 = vpop.f32.mrb[16].mxu0 }
 0x552   :  { %v1670_v0 = vadd.f32 %v1937_v63, %v1575_v62  ;;  %v1664_v2 = vpop.f32.mrb[17].mxu0 }
 0x553   :  { %v1665_v7 = vadd.f32 %v1664_v2, %v1575_v62 }
 0x554   :  { %v1674_v10 = vadd.f32 %v1670_v0, %v2276_v13 }
 0x555   :  { %v1673_v12 = vadd.f32 %v1665_v7, %v2263_v9 }
 0x556   :  { %v1678_v14 = vsel %vm87_vm0, %v1674_v10, 0.0 }
 0x557   :  { %1679 = vadd.xlane.f32.xlu1 %v1678_v14  ;;  %v1675_v15 = vsel %vm87_vm0, %v1673_v12, 0.0 }
 0x558   :  { %1676 = vadd.xlane.f32.xlu0 %v1675_v15 }
 0x5e4   :  { %v1680_v16 = vpop.xlane.xlu1 %1679 }
 0x5e5   :  { %v1683_v17 = vmul.f32 0.03125, %v1680_v16  ;;  %v1677_v18 = vpop.xlane.xlu0 %1676 }
 0x5e6   :  { %v1682_v19 = vmul.f32 0.03125, %v1677_v18 }
 0x5e7   :  { %v1685_v20 = vsub.f32 %v1674_v10, %v1683_v17 }
 0x5e8   :  { %v1684_v21 = vsub.f32 %v1673_v12, %v1682_v19 }
 0x5e9   :  { %v1687_v25 = vmul.f32 %v1685_v20, %v1685_v20  ;;  %v1716_v42 = vmul.f32 %v1714_v38, %v1685_v20 }
 0x5ea   :  { %v1686_v23 = vmul.f32 %v1684_v21, %v1684_v21  ;;  %v1715_v5 = vmul.f32 %v1714_v38, %v1684_v21 }
 0x5eb   :  { %v1691_v13 = vsel %vm87_vm0, %v1687_v25, 0.0 }
 0x5ec   :  { %v1688_v24 = vsel %vm87_vm0, %v1686_v23, 0.0 }
 0x5ed   :  { %1689 = vadd.xlane.f32.xlu0 %v1688_v24 }
 0x5f1   :  { %1692 = vadd.xlane.f32.xlu0 %v1691_v13 }
 0x67a   :  { %v1690_v9 = vpop.xlane.xlu0 %1689 }
 0x67b   :  { %v1695_v26 = vmul.f32 0.032258064, %v1690_v9 }
 0x67d   :  { %2001 = vrsqrt.f32 %v1695_v26  ;;  %vm1699_vm5 = vcmp.eq.f32.partialorder %v1695_v26, inf  ;;  %v1702_v31 = vand.u32 2147483648, %v1695_v26  ;;  %vm1701_vm6 = vcmp.eq.f32.partialorder %v1695_v26, 0.0 }
 0x67e   :  { %v1693_v27 = vpop.xlane.xlu0 %1692 }
 0x67f   :  { %v1696_v28 = vmul.f32 0.032258064, %v1693_v27 }
 0x681   :  { %2003 = vrsqrt.f32 %v1696_v28  ;;  %vm1706_vm7 = vcmp.eq.f32.partialorder %v1696_v28, inf  ;;  %v1709_v34 = vand.u32 2147483648, %v1696_v28  ;;  %vm1708_vm8 = vcmp.eq.f32.partialorder %v1696_v28, 0.0 }
 0x687   :  { %v2002_v29 = vpop.eup %2001 }
 0x688   :  { %v1698_v30 = vmul.f32 %v2002_v29, %v1695_v26 }
 0x68a   :  { %v1700_v32 = vsel %vm1699_vm5, %v1695_v26, %v1698_v30 }
 0x68b   :  { %v2004_v3 = vpop.eup %2003  ;;  %v1703_v4 = vsel %vm1701_vm6, %v1702_v31, %v1700_v32 }
 0x68c   :  { %v1717_v6 = vadd.f32 1e-06, %v1703_v4  ;;  %v1705_v33 = vmul.f32 %v2004_v3, %v1696_v28 }
 0x68e   :  { %v1707_v35 = vsel %vm1706_vm7, %v1696_v28, %v1705_v33  ;;  %2005 = vrcp.f32 %v1717_v6 }
 0x68f   :  { %v1710_v36 = vsel %vm1708_vm8, %v1709_v34, %v1707_v35 }
 0x690   :  { %v1718_v37 = vadd.f32 1e-06, %v1710_v36 }
 0x692   :  { %2007 = vrcp.f32 %v1718_v37 }
 0x698   :  { %v2006_v40 = vpop.eup %2005 }
 0x699   :  { %v1721_v41 = vmul.f32 %v2006_v40, %v1715_v5 }
 0x69b   :  { %v1727_v43 = vadd.f32 %v1726_v8, %v1721_v41 }
 0x69c   :  { %v2008_v44 = vpop.eup %2007 }
 0x69d   :  { %v1722_v45 = vmul.f32 %v2008_v44, %v1716_v42  ;;  %1729 = vst.msk [vmem:[#allocation10] sm:$0xff] %vm87_vm0, %v1727_v43 }
 0x69f   :  { %v1728_v46 = vadd.f32 %v1726_v8, %v1722_v45 }
 0x6a1   :  { %1730 = vst.msk [vmem:[#allocation10 + $0x8] sm:$0xff] %vm87_vm0, %v1728_v46 }
 0x6a2   :  { %2108 = shalt.err (!%p2105_p8)
}
 0x6a3   :  { %s2109_s0 = scalar_lea.hbm %s2442_s5, 256 }
 0x6a4   :  { %p2110_p9 = scmp.ne.s32.totalorder %s2442_s5, %s2109_s0  ;;  %p2113_p10 = scmp.lt.u32.totalorder %s2109_s0, %s2442_s5 }
 0x6a6   :  { %p2115_p11 = pnand %p2113_p10, %p2110_p9 }
 0x6a8   :  { %2118 = shalt.err (!%p2115_p11)
}
 0x6a9   :  { %1742 = dma.vmem_to_hbm [thread:$0]  %s1737_s26, 256, %s2442_s5, [#allocation4], %s2129_s30, %s2129_s30, %s2130_s6  }
 0x6aa   :  { %2125 = dma.done.wait [#allocation4], 256  }
 0x6ab   :  { %2126 = vsyncadd [#allocation4], 4294967040 }
 0x6ac   :  { %1746 = vsyncpa [#allocation3], 1 }
 0x6ad   :  { %1747 = vsyncpa [#allocation6], 1 }
 0x6ae   :  { %1748 = vsyncpa [#allocation9], 1 }
 0x6af   :  { %1749 = vsyncpa [#allocation4], 1 }

</bundles_post_ra>
